<compile_context>
chip_gen: v7x
topology: tpu7x:2x2x1
jax: 0.10.0
libtpu: 0.0.40
codegen_flags: <defaults>
</compile_context>

<pallas_src>
import functools
import math

import jax
import jax.numpy as jnp
from jax.experimental import pallas as pl
from jax.experimental.pallas import tpu as pltpu


_TARGET_TILE_BYTES = 4 << 20   # ~4 MiB of real activation bytes per grid step
_VMEM_BUDGET_BYTES = 24 << 20  # budget for double-buffered in/out blocks (v7x-safe)


def _round_up(n, m):
    return -(-n // m) * m


# ----------------------------- Pallas kernel -----------------------------

def _lr_kernel(x_ref, w_ref, b_ref, o_ref, *, apply_sigmoid):
    # x: (tb, D) VMEM | w: (1, D) VMEM (resident) | b: (1, 1) SMEM | o: (tb, 1) VMEM
    x = x_ref[...].astype(jnp.float32)
    w = w_ref[...].astype(jnp.float32)
    bias = b_ref[0, 0].astype(jnp.float32)
    # Dout == 1 -> VPU broadcast-multiply + per-row lane reduction (f32 accumulate)
    # instead of a lane-sparse 1-column MXU matmul.
    y = jnp.sum(x * w, axis=-1, keepdims=True) + bias
    if apply_sigmoid:
        y = jax.nn.sigmoid(y)
    o_ref[...] = y.astype(o_ref.dtype)
    # TODO(synk): small-D (<128) regime could fold 128//D rows per lane-row wrapper-side
    # and reduce per segment, so vregs/loads/stores are not mostly lane-empty.


# ----------------------------- Wrapper -----------------------------

def _select_tile_rows(batch, d, itemsize):
    """Per-step batch-tile height (multiple of the sublane packing)."""
    align = max(8, 32 // itemsize)            # 8 rows f32, 16 rows bf16
    row_hbm = d * itemsize                    # true bytes moved per activation row
    row_vmem = _round_up(d, 128) * itemsize   # lane-padded VMEM bytes per activation row
    row_out = 128 * itemsize                  # (tb, 1) output column pads to 128 lanes

    # (a) amortize ~0.35us per-step overhead: aim for ~4 MiB of activations per step.
    tb = max(512, _TARGET_TILE_BYTES // max(row_hbm, 1))
    # (b) keep double-buffered x/out blocks (+ resident weight row) within a VMEM budget
    #     that is safe even on v7x (64 MiB physical / 32 MiB scoped default).
    w_bytes = 2 * 8 * _round_up(d, 128) * 4
    usable = max(_VMEM_BUDGET_BYTES - w_bytes, 2 * (row_vmem + row_out) * align)
    tb = min(tb, usable // (2 * (row_vmem + row_out)))
    tb = max(align, (tb // align) * align)
    # (c) never bigger than the (aligned) batch; prefer >=2 grid steps so both v7x
    #     TensorCores get work and the DMA pipeline actually double-buffers.
    b_rows = _round_up(batch, align)
    if b_rows <= tb:
        tb = _round_up(-(-b_rows // 2), align) if b_rows >= 2 * align else b_rows
    return int(tb)


def lr_forward(params, x, *, sigmoid=False):
    """params: {'w': (1, D), 'b': (1, 1)}; x: (B, D) -> (B, 1)."""
    w, b = params["w"], params["b"]
    B, D = x.shape
    assert w.shape == (1, D), w.shape
    assert b.shape == (1, 1), b.shape

    itemsize = int(jnp.dtype(x.dtype).itemsize)
    tb = _select_tile_rows(B, D, itemsize)
    num_steps = int(pl.cdiv(B, tb))
    # TODO(synk): for extreme D (a single 8-row tile exceeding VMEM) add a K-tiling grid
    # axis marked "arbitrary" with an f32 scratch accumulator instead of full-row blocks.

    # Explicit scoped-VMEM limit (v5e default is only 16 MiB; stay well under v7x's 64 MiB).
    x_blk = tb * _round_up(D, 128) * itemsize
    o_blk = tb * 128 * itemsize
    w_blk = 8 * _round_up(D, 128) * 4
    vmem_limit = int(max(2 * (x_blk + o_blk) + 2 * w_blk + (2 << 20), 16 << 20))

    cost = pl.CostEstimate(
        flops=int(2 * B * D),
        transcendentals=int(B if sigmoid else 0),
        bytes_accessed=int(B * D * itemsize + B * itemsize + D * 4 + 4),
    )

    return pl.pallas_call(
        functools.partial(_lr_kernel, apply_sigmoid=sigmoid),
        out_shape=jax.ShapeDtypeStruct((B, 1), x.dtype),
        grid_spec=pltpu.PrefetchScalarGridSpec(
            num_scalar_prefetch=0,
            grid=(num_steps,),
            in_specs=[
                pl.BlockSpec((tb, D), lambda i: (i, 0)),             # activations: batch-tiled
                pl.BlockSpec((1, D), lambda i: (0, 0)),              # weight row: resident
                pl.BlockSpec(memory_space=pltpu.MemorySpace.SMEM),   # bias scalar in SMEM
            ],
            out_specs=pl.BlockSpec((tb, 1), lambda i: (i, 0)),
        ),
        compiler_params=pltpu.CompilerParams(
            dimension_semantics=("parallel",),
            vmem_limit_bytes=vmem_limit,
        ),
        cost_estimate=cost,
    )(x, w, b)


# ----------------------------- Parameter setup -----------------------------

def init_lr_params(key, input_dim, dtype=jnp.float32):
    """PyTorch nn.Linear(input_dim, 1) default init: U(-1/sqrt(fan_in), 1/sqrt(fan_in))."""
    kw, kb = jax.random.split(key)
    bound = 1.0 / math.sqrt(input_dim)
    w = jax.random.uniform(kw, (1, input_dim), dtype, -bound, bound)
    b = jax.random.uniform(kb, (1, 1), dtype, -bound, bound)
    return {"w": w, "b": b}


# Pure-JAX reference
def lr_forward_ref(params, x, *, sigmoid=False):
    y = x @ params["w"].T + params["b"]
    return jax.nn.sigmoid(y) if sigmoid else y


# ----------------------------- Main -----------------------------

if __name__ == "__main__":
    key = jax.random.PRNGKey(0)
    kx, kp, kx2 = jax.random.split(key, 3)

    # Small toy case: batch=8, input_dim=32 (module default: sigmoid=False)
    batch, input_dim = 8, 32
    x = jax.random.normal(kx, (batch, input_dim), jnp.float32)
    params = init_lr_params(kp, input_dim)

    out = jax.block_until_ready(lr_forward(params, x, sigmoid=False))
    ref = lr_forward_ref(params, x, sigmoid=False)
    assert out.shape == (batch, 1), out.shape
    assert jnp.allclose(out, ref, atol=1e-5, rtol=1e-5), "mismatch vs reference (no sigmoid)"

    # Sigmoid variant (same fused kernel, EUP epilogue)
    out_s = jax.block_until_ready(lr_forward(params, x, sigmoid=True))
    ref_s = lr_forward_ref(params, x, sigmoid=True)
    assert jnp.allclose(out_s, ref_s, atol=1e-5, rtol=1e-5), "mismatch vs reference (sigmoid)"

    # Unaligned batch: exercises the pad-free cdiv grid (2 steps, masked ragged tail)
    # and the >=2-step megacore split.
    batch2 = 300
    x2 = jax.random.normal(kx2, (batch2, input_dim), jnp.float32)
    out2 = jax.block_until_ready(lr_forward(params, x2, sigmoid=False))
    ref2 = lr_forward_ref(params, x2, sigmoid=False)
    assert out2.shape == (batch2, 1), out2.shape
    assert jnp.allclose(out2, ref2, atol=1e-5, rtol=1e-5), "mismatch vs reference (batched)"

    # bf16 activations pass straight through (halves dominant HBM traffic);
    # in-kernel accumulation stays f32.
    x3 = x2.astype(jnp.bfloat16)
    out3 = jax.block_until_ready(lr_forward(params, x3, sigmoid=False))
    ref3 = lr_forward_ref(params, x3.astype(jnp.float32), sigmoid=False)
    assert out3.shape == (batch2, 1), out3.shape
    assert jnp.allclose(out3.astype(jnp.float32), ref3, atol=5e-2, rtol=5e-2), \
        "mismatch vs reference (bf16)"

    print("KERNEL_OK")
</pallas_src>

<mosaic_0001>
module attributes {stable_mosaic.version = 11 : i64} {
  func.func @_lr_kernel(%arg0: i32, %arg1: memref<8x32xf32, #tpu.memory_space<vmem>>, %arg2: memref<1x32xf32, #tpu.memory_space<vmem>>, %arg3: memref<1x1xf32, #tpu.memory_space<smem>>, %arg4: memref<8x1xf32, #tpu.memory_space<vmem>>) attributes {dimension_semantics = [#tpu.dimension_semantics<parallel>], iteration_bounds = array<i64: 1>, scalar_prefetch = 0 : i64, scratch_operands = 0 : i64, tpu.core_type = #tpu.core_type<tc>, window_params = [{transform_indices = @transform_0, window_bounds = array<i64: 8, 32>}, {pipeline_mode = #tpu.pipeline_mode<synchronous>, transform_indices = @transform_1, window_bounds = array<i64: 1, 32>}, {transform_indices = @transform_2, window_bounds = array<i64: 1, 1>}, {transform_indices = @transform_3, window_bounds = array<i64: 8, 1>}]} {
    %c0 = arith.constant 0 : index
    %c0_0 = arith.constant 0 : index
    %0 = vector.load %arg1[%c0, %c0_0] : memref<8x32xf32, #tpu.memory_space<vmem>>, vector<8x32xf32>
    %c0_1 = arith.constant 0 : index
    %c0_2 = arith.constant 0 : index
    %1 = vector.load %arg2[%c0_1, %c0_2] : memref<1x32xf32, #tpu.memory_space<vmem>>, vector<1x32xf32>
    %c0_3 = arith.constant 0 : index
    %c0_4 = arith.constant 0 : index
    %2 = memref.load %arg3[%c0_3, %c0_4] : memref<1x1xf32, #tpu.memory_space<smem>>
    %3 = vector.broadcast %1 : vector<1x32xf32> to vector<8x32xf32>
    %4 = arith.mulf %0, %3 : vector<8x32xf32>
    %cst = arith.constant dense<0.000000e+00> : vector<8xf32>
    %5 = vector.multi_reduction <add>, %4, %cst [1] : vector<8x32xf32> to vector<8xf32>
    %6 = vector.shape_cast %5 : vector<8xf32> to vector<8x1xf32>
    %7 = vector.broadcast %2 : f32 to vector<8x1xf32>
    %8 = arith.addf %6, %7 : vector<8x1xf32>
    %c0_5 = arith.constant 0 : index
    %c0_6 = arith.constant 0 : index
    %9 = vector.load %arg4[%c0_5, %c0_6] : memref<8x1xf32, #tpu.memory_space<vmem>>, vector<8x1xf32>
    tpu.vector_store %arg4[%c0_5, %c0_6], %8 {strides = array<i32>} : memref<8x1xf32, #tpu.memory_space<vmem>>, vector<8x1xf32>,
    return
  }
  func.func @transform_0(%arg0: i32) -> (i32, i32) {
    %c0_i32 = arith.constant 0 : i32
    %c0_i32_0 = arith.constant 0 : i32
    return %arg0, %c0_i32 : i32, i32
  }
  func.func @transform_1(%arg0: i32) -> (i32, i32) {
    %c0_i32 = arith.constant 0 : i32
    %c0_i32_0 = arith.constant 0 : i32
    %c0_i32_1 = arith.constant 0 : i32
    return %c0_i32, %c0_i32_0 : i32, i32
  }
  func.func @transform_2(%arg0: i32) -> (i32, i32) {
    %c0_i32 = arith.constant 0 : i32
    %c0_i32_0 = arith.constant 0 : i32
    %c0_i32_1 = arith.constant 0 : i32
    return %c0_i32, %c0_i32_0 : i32, i32
  }
  func.func @transform_3(%arg0: i32) -> (i32, i32) {
    %c0_i32 = arith.constant 0 : i32
    %c0_i32_0 = arith.constant 0 : i32
    return %arg0, %c0_i32 : i32, i32
  }
}

</mosaic_0001>

<bundles_post_ra>
// kernel: tpu_custom_call.1
= control target key start
LH: loop header
LB: loop body
LE: loop exit
PB: predicated region body
PF: predicated region fallthrough
CT: control target
= control target key end

     0   :  { %9 = vsyncpa [#allocation4], 0  ;;  %s76_s12 = smov [#allocation3]   ;;  %s118_s0 = inlined_call_operand.hbm [shape: f32[8,32], index: 0, kind: input, shape index: {}]   ;;  %s119_s1 = inlined_call_operand.vmem [shape: f32[1,32], index: 1, kind: input, shape index: {}]   ;;  %s120_s2 = inlined_call_operand.<no memory space> [shape: f32[1,1], index: 2, kind: input, shape index: {}]   ;;  %s121_s3 = inlined_call_operand.vmem [shape: f32[8,1], index: 3, kind: output, shape index: {}]  }
   0x1   :  { %s16_s13 = sshll.u32 %s76_s12, 4  ;;  %s52_s16 = scalar_lea.hbm %s118_s0, 128  ;;  %s17_s13 = int_to_ptr.vmem [resolvable:$true] %s16_s13 }
   0x2   :  { %p53_p0 = scmp.ne.s32.totalorder %s118_s0, %s52_s16  ;;  %p56_p1 = scmp.lt.u32.totalorder %s52_s16, %s118_s0 }
   0x4   :  { %p58_p2 = pnand %p56_p1, %p53_p0 }
   0x6   :  { %61 = shalt.err (!%p58_p2)
}
   0x7   :  { %s62_s21 = scalar_lea.vmem %s17_s13, 128  ;;  %p67_p4 = scmp.lt.s32.totalorder %s17_s13, %s17_s13 }
   0x8   :  { %p63_p3 = scmp.ne.s32.totalorder %s17_s13, %s62_s21  ;;  %p68_p5 = scmp.lt.s32.totalorder %s62_s21, %s62_s21 }
   0xa   :  { %p69_p6 = por %p68_p5, %p67_p4 }
   0xc   :  { %p70_p7 = pnand %p69_p6, %p63_p3 }
   0xe   :  { %73 = shalt.err (!%p70_p7)
}
   0xf   :  { %19 = dma.hbm_to_vmem [thread:$0]  %s118_s0, 128, %s17_s13, [#allocation4]  }
  0x10   :  { %74 = dma.done.wait [#allocation4], 128  }
  0x11   :  { %75 = vsyncadd [#allocation4], 4294967168  ;;  %v27_v0 = vld [vmem:[#allocation3] sm:$0xff]  ;;  %vm37_vm0 = vcmask 261120   ;;  %v41_v4 = vstv %s120_s2  ;;  %vm43_vm1 = vcmask 7168  }
  0x12   :  { %v50_v1 = vld [vmem:[%s119_s1] ss:$0 sm:$0xff] }
  0x13   :  { %v36_v2 = vmul.f32 %v50_v1, %v27_v0 }
  0x15   :  { %v38_v3 = vsel %vm37_vm0, %v36_v2, 0.0 }
  0x16   :  { %39 = vadd.xlane.f32.xlu0 %v38_v3 }
  0xa3   :  { %v40_v5 = vpop.xlane.xlu0 %39 }
  0xa4   :  { %v42_v6 = vadd.f32 %v41_v4, %v40_v5 }
  0xa6   :  { %44 = vst.msk [vmem:[%s121_s3] sm:$0xff] %vm43_vm1, %v42_v6 }
  0xa7   :  { %49 = vsyncpa [#allocation4], 1 }

</bundles_post_ra>
